<compile_context>
chip_gen: v7x
topology: tpu7x:2x2x1
jax: 0.10.0
libtpu: 0.0.40
codegen_flags: <defaults>
</compile_context>

<pallas_src>
import functools

import jax
import jax.numpy as jnp
from jax.experimental import pallas as pl
from jax.experimental.pallas import tpu as pltpu

# Deterministic "config" (mirrors the global `config` used by the module).
config = {"gamma": 2.0}
MARGIN = 1.0

LANES = 128          # lane width
MAX_TILE_ROWS = 2048 # 1 MiB / input / buffer: fits all of v5e/v6e/v7x VMEM budgets
NUM_SPLITS = 2       # row-range split -> dual TensorCore on v7x, sequential elsewhere


def _cdiv(a, b):
    return -(-a // b)


def _round_up(a, b):
    return _cdiv(a, b) * b


def _neg_pow(x, gamma):
    """x ** (-gamma) for positive x, specialized at trace time (gamma: python float)."""
    if gamma == 1.0:
        return 1.0 / x
    if gamma == 2.0:
        return 1.0 / (x * x)
    if gamma == 3.0:
        return 1.0 / (x * x * x)
    if gamma == 4.0:
        x2 = x * x
        return 1.0 / (x2 * x2)
    # General float gamma: 2 EUP transcendentals instead of the 2x(log+exp)
    # that jnp.power with a float exponent would lower to per operand.
    return jnp.exp(jnp.float32(-gamma) * jnp.log(x))


def _loss_kernel(*refs, margin, gamma, apply_weight):
    if apply_weight:
        pos_ref, neg_ref, sf_ref, of_ref, out_ref = refs
    else:
        pos_ref, neg_ref, out_ref = refs

    i = pl.program_id(1)  # inner reduction axis

    @pl.when(i == 0)
    def _():
        out_ref[...] = jnp.zeros_like(out_ref)

    dist = jnp.maximum(jnp.float32(margin) + pos_ref[...] - neg_ref[...],
                       jnp.float32(0.0))
    if apply_weight:
        w = (_neg_pow(sf_ref[...], gamma) + _neg_pow(of_ref[...], gamma)) * jnp.float32(0.5)
        dist = w * dist

    # Fold the (tile_rows, 128) tile into an (8, 128) partial-sum vreg block
    # with pure VPU adds; the expensive cross-lane reduce happens once, in the
    # wrapper, on the tiny (NUM_SPLITS, 8, 128) output.
    tile_rows, lanes = dist.shape
    partial = dist.reshape(tile_rows // 8, 8, lanes).sum(axis=0)       # (8, 128)
    out_ref[...] += partial.reshape(1, 8, lanes)


def margin_ranking_loss(pos_scores, neg_scores, s_freqs, o_freqs,
                        margin=MARGIN, gamma=config["gamma"]):
    """Scalar f32 loss matching the PyTorch module's forward (any N >= 1)."""
    margin = float(margin)
    gamma = float(gamma)
    apply_weight = (gamma != 1.0)

    n = int(pos_scores.shape[0])

    # ----- tiling: biggest slab that fits comfortably in VMEM on all gens -----
    rows_needed = _cdiv(n, LANES)
    tile_rows = min(MAX_TILE_ROWS, _round_up(_cdiv(rows_needed, NUM_SPLITS), 8))
    block_elems = NUM_SPLITS * tile_rows * LANES
    n_pad = _round_up(n, block_elems)
    rows = n_pad // LANES
    steps_per_split = rows // (NUM_SPLITS * tile_rows)
    pad = n_pad - n

    # Padded elements must contribute exactly zero to the sum:
    #   pos := 0, neg := |margin| + 1e6  ->  margin + 0 - neg < 0  ->  dist = 0
    #   freqs := 1.0                     ->  finite weight, weight * 0 = 0
    def prep(x, pad_value):
        x = x.astype(jnp.float32).reshape(-1)
        if pad:
            x = jnp.concatenate(
                [x, jnp.full((pad,), jnp.float32(pad_value), dtype=jnp.float32)])
        return x.reshape(rows, LANES)

    inputs = [prep(pos_scores, 0.0), prep(neg_scores, abs(margin) + 1e6)]
    if apply_weight:
        inputs += [prep(s_freqs, 1.0), prep(o_freqs, 1.0)]

    in_spec = pl.BlockSpec((tile_rows, LANES),
                           lambda c, i: (c * steps_per_split + i, 0))
    out_spec = pl.BlockSpec((1, 8, LANES), lambda c, i: (c, 0, 0))

    kernel = functools.partial(_loss_kernel, margin=margin, gamma=gamma,
                               apply_weight=apply_weight)

    partials = pl.pallas_call(
        kernel,
        out_shape=jax.ShapeDtypeStruct((NUM_SPLITS, 8, LANES), jnp.float32),
        grid_spec=pltpu.PrefetchScalarGridSpec(
            num_scalar_prefetch=0,
            grid=(NUM_SPLITS, steps_per_split),
            in_specs=[in_spec] * len(inputs),
            out_specs=out_spec,
        ),
        compiler_params=pltpu.CompilerParams(
            # leading axis -> megacore split on v7x; inner axis is the reduction
            dimension_semantics=("parallel", "arbitrary"),
        ),
    )(*inputs)

    # Tiny final reduction + mean over the TRUE element count.
    return jnp.sum(partials) / jnp.float32(n)


def _reference(pos, neg, sf, of, margin=MARGIN, gamma=config["gamma"]):
    dist = jnp.maximum(margin + pos - neg, 0.0)
    if gamma != 1:
        dist = (sf ** (-gamma) + of ** (-gamma)) / 2.0 * dist
    return jnp.mean(dist)


if __name__ == "__main__":
    key = jax.random.PRNGKey(0)
    k1, k2, k3, k4 = jax.random.split(key, 4)

    N = 4096  # number of (pos, neg) score pairs
    pos_scores = jax.random.normal(k1, (N,), dtype=jnp.float32)
    neg_scores = jax.random.normal(k2, (N,), dtype=jnp.float32)
    # frequencies must be positive for the negative power (same precondition as PyTorch)
    s_freqs = jax.random.uniform(k3, (N,), dtype=jnp.float32, minval=0.5, maxval=4.0)
    o_freqs = jax.random.uniform(k4, (N,), dtype=jnp.float32, minval=0.5, maxval=4.0)

    # 1) configured gamma (2.0) -> weighted path, specialized 1/(x*x)
    loss = margin_ranking_loss(pos_scores, neg_scores, s_freqs, o_freqs)
    loss = jax.block_until_ready(loss)
    ref = _reference(pos_scores, neg_scores, s_freqs, o_freqs)
    assert jnp.allclose(loss, ref, rtol=1e-5, atol=1e-5), (loss, ref)

    # 2) gamma == 1 -> unweighted path (freqs not DMA'd) + ragged N (padding path)
    M = 1000
    loss1 = margin_ranking_loss(pos_scores[:M], neg_scores[:M],
                                s_freqs[:M], o_freqs[:M], gamma=1.0)
    loss1 = jax.block_until_ready(loss1)
    ref1 = _reference(pos_scores[:M], neg_scores[:M], s_freqs[:M], o_freqs[:M],
                      gamma=1.0)
    assert jnp.allclose(loss1, ref1, rtol=1e-5, atol=1e-5), (loss1, ref1)

    # 3) non-integer gamma -> exp/log fallback path
    loss2 = margin_ranking_loss(pos_scores[:M], neg_scores[:M],
                                s_freqs[:M], o_freqs[:M], gamma=2.5)
    loss2 = jax.block_until_ready(loss2)
    ref2 = _reference(pos_scores[:M], neg_scores[:M], s_freqs[:M], o_freqs[:M],
                      gamma=2.5)
    assert jnp.allclose(loss2, ref2, rtol=1e-5, atol=1e-5), (loss2, ref2)

    print("KERNEL_OK")
</pallas_src>

<mosaic_0001>
module attributes {stable_mosaic.version = 11 : i64} {
  func.func @_loss_kernel(%arg0: i32, %arg1: i32, %arg2: memref<16x128xf32, #tpu.memory_space<vmem>>, %arg3: memref<16x128xf32, #tpu.memory_space<vmem>>, %arg4: memref<16x128xf32, #tpu.memory_space<vmem>>, %arg5: memref<16x128xf32, #tpu.memory_space<vmem>>, %arg6: memref<1x8x128xf32, #tpu.memory_space<vmem>>) attributes {dimension_semantics = [#tpu.dimension_semantics<parallel>, #tpu.dimension_semantics<arbitrary>], iteration_bounds = array<i64: 2, 1>, scalar_prefetch = 0 : i64, scratch_operands = 0 : i64, tpu.core_type = #tpu.core_type<tc>, window_params = [{transform_indices = @transform_0, window_bounds = array<i64: 16, 128>}, {transform_indices = @transform_1, window_bounds = array<i64: 16, 128>}, {transform_indices = @transform_2, window_bounds = array<i64: 16, 128>}, {transform_indices = @transform_3, window_bounds = array<i64: 16, 128>}, {transform_indices = @transform_4, window_bounds = array<i64: 1, 8, 128>}]} {
    %c0_i32 = arith.constant 0 : i32
    %0 = arith.cmpi eq, %arg1, %c0_i32 : i32
    %1 = arith.extui %0 : i1 to i32
    %c0_i32_0 = arith.constant 0 : i32
    %2 = arith.cmpi ne, %1, %c0_i32_0 : i32
    scf.if %2 {
      %cst_19 = arith.constant 0.000000e+00 : f32
      %28 = vector.broadcast %cst_19 : f32 to vector<1x8x128xf32>
      %c0_20 = arith.constant 0 : index
      %c0_21 = arith.constant 0 : index
      %c0_22 = arith.constant 0 : index
      %29 = vector.load %arg6[%c0_20, %c0_21, %c0_22] : memref<1x8x128xf32, #tpu.memory_space<vmem>>, vector<1x8x128xf32>
      tpu.vector_store %arg6[%c0_20, %c0_21, %c0_22], %28 {strides = array<i32>} : memref<1x8x128xf32, #tpu.memory_space<vmem>>, vector<1x8x128xf32>,
    } else {
    }
    %c0 = arith.constant 0 : index
    %c0_1 = arith.constant 0 : index
    %3 = vector.load %arg2[%c0, %c0_1] : memref<16x128xf32, #tpu.memory_space<vmem>>, vector<16x128xf32>
    %cst = arith.constant 1.000000e+00 : f32
    %4 = vector.broadcast %cst : f32 to vector<16x128xf32>
    %5 = arith.addf %4, %3 : vector<16x128xf32>
    %c0_2 = arith.constant 0 : index
    %c0_3 = arith.constant 0 : index
    %6 = vector.load %arg3[%c0_2, %c0_3] : memref<16x128xf32, #tpu.memory_space<vmem>>, vector<16x128xf32>
    %7 = arith.subf %5, %6 : vector<16x128xf32>
    %cst_4 = arith.constant 0.000000e+00 : f32
    %8 = vector.broadcast %cst_4 : f32 to vector<16x128xf32>
    %9 = arith.maximumf %7, %8 : vector<16x128xf32>
    %c0_5 = arith.constant 0 : index
    %c0_6 = arith.constant 0 : index
    %10 = vector.load %arg4[%c0_5, %c0_6] : memref<16x128xf32, #tpu.memory_space<vmem>>, vector<16x128xf32>
    %11 = arith.mulf %10, %10 : vector<16x128xf32>
    %cst_7 = arith.constant 1.000000e+00 : f32
    %12 = vector.broadcast %cst_7 : f32 to vector<16x128xf32>
    %13 = arith.divf %12, %11 : vector<16x128xf32>
    %c0_8 = arith.constant 0 : index
    %c0_9 = arith.constant 0 : index
    %14 = vector.load %arg5[%c0_8, %c0_9] : memref<16x128xf32, #tpu.memory_space<vmem>>, vector<16x128xf32>
    %15 = arith.mulf %14, %14 : vector<16x128xf32>
    %cst_10 = arith.constant 1.000000e+00 : f32
    %16 = vector.broadcast %cst_10 : f32 to vector<16x128xf32>
    %17 = arith.divf %16, %15 : vector<16x128xf32>
    %18 = arith.addf %13, %17 : vector<16x128xf32>
    %cst_11 = arith.constant 5.000000e-01 : f32
    %19 = vector.broadcast %cst_11 : f32 to vector<16x128xf32>
    %20 = arith.mulf %18, %19 : vector<16x128xf32>
    %21 = arith.mulf %20, %9 : vector<16x128xf32>
    %22 = vector.shape_cast %21 : vector<16x128xf32> to vector<2x8x128xf32>
    %cst_12 = arith.constant dense<0.000000e+00> : vector<8x128xf32>
    %23 = vector.multi_reduction <add>, %22, %cst_12 [0] : vector<2x8x128xf32> to vector<8x128xf32>
    %c0_13 = arith.constant 0 : index
    %c0_14 = arith.constant 0 : index
    %c0_15 = arith.constant 0 : index
    %24 = vector.load %arg6[%c0_13, %c0_14, %c0_15] : memref<1x8x128xf32, #tpu.memory_space<vmem>>, vector<1x8x128xf32>
    %25 = vector.shape_cast %23 : vector<8x128xf32> to vector<1x8x128xf32>
    %26 = arith.addf %24, %25 : vector<1x8x128xf32>
    %c0_16 = arith.constant 0 : index
    %c0_17 = arith.constant 0 : index
    %c0_18 = arith.constant 0 : index
    %27 = vector.load %arg6[%c0_16, %c0_17, %c0_18] : memref<1x8x128xf32, #tpu.memory_space<vmem>>, vector<1x8x128xf32>
    tpu.vector_store %arg6[%c0_16, %c0_17, %c0_18], %26 {strides = array<i32>} : memref<1x8x128xf32, #tpu.memory_space<vmem>>, vector<1x8x128xf32>,
    return
  }
  func.func @transform_0(%arg0: i32, %arg1: i32) -> (i32, i32) {
    %c1_i32 = arith.constant 1 : i32
    %0 = arith.muli %arg0, %c1_i32 : i32
    %1 = arith.addi %0, %arg1 : i32
    %c0_i32 = arith.constant 0 : i32
    %c0_i32_0 = arith.constant 0 : i32
    return %1, %c0_i32 : i32, i32
  }
  func.func @transform_1(%arg0: i32, %arg1: i32) -> (i32, i32) {
    %c1_i32 = arith.constant 1 : i32
    %0 = arith.muli %arg0, %c1_i32 : i32
    %1 = arith.addi %0, %arg1 : i32
    %c0_i32 = arith.constant 0 : i32
    %c0_i32_0 = arith.constant 0 : i32
    return %1, %c0_i32 : i32, i32
  }
  func.func @transform_2(%arg0: i32, %arg1: i32) -> (i32, i32) {
    %c1_i32 = arith.constant 1 : i32
    %0 = arith.muli %arg0, %c1_i32 : i32
    %1 = arith.addi %0, %arg1 : i32
    %c0_i32 = arith.constant 0 : i32
    %c0_i32_0 = arith.constant 0 : i32
    return %1, %c0_i32 : i32, i32
  }
  func.func @transform_3(%arg0: i32, %arg1: i32) -> (i32, i32) {
    %c1_i32 = arith.constant 1 : i32
    %0 = arith.muli %arg0, %c1_i32 : i32
    %1 = arith.addi %0, %arg1 : i32
    %c0_i32 = arith.constant 0 : i32
    %c0_i32_0 = arith.constant 0 : i32
    return %1, %c0_i32 : i32, i32
  }
  func.func @transform_4(%arg0: i32, %arg1: i32) -> (i32, i32, i32) {
    %c0_i32 = arith.constant 0 : i32
    %c0_i32_0 = arith.constant 0 : i32
    %c0_i32_1 = arith.constant 0 : i32
    return %arg0, %c0_i32, %c0_i32_0 : i32, i32, i32
  }
}

</mosaic_0001>

<bundles_post_ra>
// kernel: tpu_custom_call.1
= control target key start
LH: loop header
LB: loop body
LE: loop exit
PB: predicated region body
PF: predicated region fallthrough
CT: control target
= control target key end

     0   :  { %s1253_s0 = inlined_call_operand.hbm [shape: f32[32,128], index: 0, kind: input, shape index: {}]   ;;  %s1254_s1 = inlined_call_operand.hbm [shape: f32[32,128], index: 1, kind: input, shape index: {}]   ;;  %s1255_s2 = inlined_call_operand.hbm [shape: f32[32,128], index: 2, kind: input, shape index: {}]   ;;  %s1256_s3 = inlined_call_operand.hbm [shape: f32[32,128], index: 3, kind: input, shape index: {}]   ;;  %s1257_s4 = inlined_call_operand.hbm [shape: f32[2,8,128], index: 4, kind: output, shape index: {}]  }
   0x1   :  { %1269 = sst [smem:[#allocation20_spill]] %s1253_s0 }
   0x2   :  { %1270 = sst [smem:[#allocation21_spill]] %s1254_s1 }
   0x3   :  { %9 = vsyncpa [#allocation3], 0 }
   0x4   :  { %11 = vsyncpa [#allocation3 + $0x1], 0 }
   0x5   :  { %12 = vsyncpa [#allocation6], 0 }
   0x6   :  { %14 = vsyncpa [#allocation6 + $0x1], 0 }
   0x7   :  { %15 = vsyncpa [#allocation9], 0 }
   0x8   :  { %17 = vsyncpa [#allocation9 + $0x1], 0 }
   0x9   :  { %18 = vsyncpa [#allocation4], 0 }
   0xa   :  { %20 = vsyncpa [#allocation4 + $0x1], 0  ;;  %s930_s15 = smov 0   ;;  %s932_s16 = smov 0  }
   0xb   :  { %s934_s17 = smov 0   ;;  %s936_s18 = smov 0  }
   0xc   :  { %s938_s19 = smov 0   ;;  %s940_s20 = smov 0  }
   0xd LB: > { %1271 = sst [smem:[#allocation15_spill]] %s884_s17  ;;  %s961_s21 = sadd.s32 4294967295, %s896_s20   ;;  %s896_s20 = sphi %s940_s20, %s26_s20   ;;  %s892_s19 = sphi %s938_s19, %s1298_s19   ;;  %s888_s18 = sphi %s936_s18, %s1297_s18   ;;  %s884_s17 = sphi %s934_s17, %s1296_s17   ;;  %s880_s16 = sphi %s932_s16, %s1300_s16   ;;  %s876_s15 = sphi %s930_s15, %s1299_s15  }
   0xe   : > { %1272 = sst [smem:[#allocation16_spill]] %s892_s19  ;;  %s569_s22 = sadd.s32 4294967294, %s896_s20  }
   0xf   : > { %1273 = sst [smem:[#allocation17_spill]] %s896_s20  ;;  %s38_s23 = sadd.s32 1, %s892_s19 }
  0x10   : > { %s47_s24 = sadd.s32 1, %s884_s17  ;;  %p40_p0 = scmp.ge.s32.totalorder %s38_s23, 2 }
  0x11   : > { %p54_p1 = scmp.ne.s32.totalorder %s884_s17, %s880_s16  ;;  %p55_p2 = scmp.eq.s32.totalorder %s896_s20, 0 }
  0x12   : > { %p60_p3 = scmp.ne.s32.totalorder %s880_s16, %s876_s15  ;;  %s1302_s23 = smov (%p40_p0, %s38_s23), 0 }
  0x13   : > { %1274 = sst [smem:[#allocation18_spill]] %s1302_s23  ;;  %p973_p4 = por %p55_p2, %p54_p1 }
  0x14   : > { %p61_p5 = scmp.eq.s32.totalorder %s961_s21, 0  ;;  %s44_s26 = ssub.s32 %s892_s19, %s1302_s23 }
  0x15   : > { %p168_p6 = scmp.eq.s32.totalorder %s961_s21, 1  ;;  %p45_p7 = scmp.eq.s32.totalorder %s44_s26, 0 }
  0x16   : > { %p981_p8 = por %p61_p5, %p60_p3  ;;  %p174_p10 = scmp.eq.s32.totalorder %s569_s22, 1 }
  0x17   : > { %p985_p9 = por %p168_p6, %p54_p1  ;;  %p625_p13 = scmp.lt.s32.totalorder %s896_s20, 2 }
  0x18   : > { %s1276_s27 = scalar_select %p981_p8, 1, 0 }
  0x19   : > { %s1277_s28 = scalar_select %p985_p9, 1, 0 }
  0x1a   : > { %s990_s29 = scalar_select %p45_p7, %s884_s17, %s47_s24  }
  0x1b   : > { %p992_p11 = por %p174_p10, %p60_p3  ;;  %s999_s5 = sand.u32 1, %s884_s17  }
  0x1c   : > { %1278 = sst [smem:[#allocation19_spill]] %s990_s29  ;;  %s1002_s6 = sshll.u32 %s999_s5, 4 }
  0x1d   : > { %s1279_s30 = scalar_select %p992_p11, 1, 0 }
  0x1e   : > { %s1005_s7 = sshll.u32 %s892_s19, 8  ;;  %p1009_p0 = pnand %p625_p13, %p973_p4 }
  0x1f   : > { %s216_s9 = sand.u32 1, %s896_s20   ;;  %s1281_s1 = sld [smem:[#allocation21_spill]] }
  0x20   : > { %s220_s13 = scalar_lea.vmem [#allocation5], %s1002_s6  ;;  %s1025_s22 = scalar_lea.sflag [#allocation6], %s216_s9 }
  0x21   : > { %s228_s14 = sshll.u32 %s220_s13, 4  ;;  %p1031_p4 = pneg %p1009_p0  ;;  %s1022_s14 = int_to_ptr.vmem [resolvable:$true] %s228_s14 }
  0x25   : > { %s1018_s12 = scalar_lea.hbm %s1281_s1, %s1005_s7  ;;  %s691_s11 = scalar_lea.hbm %s1281_s1, 512 }
  0x26   : > { %s686_s24 = scalar_lea.hbm %s1018_s12, 256  ;;  %p692_p7 = scmp.lt.u32.totalorder %s1018_s12, %s1281_s1 }
  0x27   : > { %p687_p3 = scmp.ne.s32.totalorder %s1018_s12, %s686_s24  ;;  %p693_p10 = scmp.lt.u32.totalorder %s691_s11, %s686_s24 }
  0x28   : > { %p695_p12 = scmp.lt.u32.totalorder %s686_s24, %s1018_s12 }
  0x29   : > { %p689_p5 = pnand %p1031_p4, %p687_p3  ;;  %p694_p13 = por %p693_p10, %p692_p7 }
  0x2b   : > { %p690_p6 = pneg %p689_p5  ;;  %p696_p1 = por %p695_p12, %p694_p13 }
  0x2d   : > { %p697_p2 = pnand %p696_p1, %p690_p6 }
  0x2f   : > { %700 = shalt.err (!%p697_p2)
}
  0x30   : > { %s701_s9 = scalar_lea.vmem %s1022_s14, 256  ;;  %s898_s26 = smov [#allocation5]  }
  0x31   : > { %p702_p3 = scmp.ne.s32.totalorder %s1022_s14, %s701_s9  ;;  %s706_s10 = sshll.u32 %s898_s26, 4  ;;  %s707_s10 = int_to_ptr.vmem [resolvable:$false] %s706_s10 }
  0x32   : > { %s708_s23 = scalar_lea.vmem %s707_s10, 512  ;;  %p709_p9 = scmp.lt.s32.totalorder %s1022_s14, %s707_s10 }
  0x33   : > { %p704_p5 = pnand %p702_p3, %p1031_p4  ;;  %p710_p8 = scmp.lt.s32.totalorder %s708_s23, %s701_s9 }
  0x35   : > { %p705_p11 = pneg %p704_p5  ;;  %p711_p7 = por %p710_p8, %p709_p9 }
  0x37   : > { %p712_p10 = pnand %p711_p7, %p705_p11 }
  0x39   : > { %715 = shalt.err (!%p712_p10)
}
  0x3a   : > { %s1261_s24 = smov 128   ;;  %s1263_s11 = smov 8  }
  0x3b   : > { %614 = dma.hbm_to_vmem [thread:$0]  (!%p1009_p0), %s1018_s12, 256, %s1022_s14, %s1025_s22, %s1261_s24, %s1261_s24, %s1263_s11  }
  0x3c   : > { %p1283_p8 = scmp.lt.s32.totalorder %s896_s20, 3  ;;  %p1284_p9 = scmp.ge.s32.totalorder %s896_s20, 1 }
  0x3d   : > { %s1286_s0 = sld [smem:[#allocation20_spill]]  ;;  %s198_s23 = scalar_lea.vmem [#allocation2], %s1002_s6 }
  0x3e   : > { %p1062_p11 = pnand %p1284_p9, %p1283_p8  ;;  %s206_s1 = sshll.u32 %s198_s23, 4  ;;  %s1073_s1 = int_to_ptr.vmem [resolvable:$true] %s206_s1 }
  0x3f   : > { %s1079_s24 = scalar_lea.hbm %s1255_s2, %s1005_s7  ;;  %s195_s11 = scalar_lea.sflag [#allocation3], %s999_s5 }
  0x40   : > { %s1285_s13 = scalar_select %p1062_p11, 1, 0 }
  0x43   : > { %s1070_s10 = scalar_lea.hbm %s1286_s0, %s1005_s7  ;;  %s721_s29 = scalar_lea.hbm %s1286_s0, 512 }
  0x44   : > { %s716_s19 = scalar_lea.hbm %s1070_s10, 256  ;;  %p722_p6 = scmp.lt.u32.totalorder %s1070_s10, %s1286_s0 }
  0x45   : > { %p717_p12 = scmp.ne.s32.totalorder %s1070_s10, %s716_s19  ;;  %p723_p13 = scmp.lt.u32.totalorder %s721_s29, %s716_s19 }
  0x46   : > { %p725_p5 = scmp.lt.u32.totalorder %s716_s19, %s1070_s10 }
  0x47   : > { %p719_p1 = pnand %p717_p12, %p1031_p4  ;;  %p724_p3 = por %p723_p13, %p722_p6 }
  0x49   : > { %p720_p2 = pneg %p719_p1  ;;  %p726_p7 = por %p725_p5, %p724_p3 }
  0x4b   : > { %p727_p10 = pnand %p726_p7, %p720_p2 }
  0x4d   : > { %730 = shalt.err (!%p727_p10)
}
  0x4e   : > { %s731_s23 = scalar_lea.vmem %s1073_s1, 256  ;;  %s901_s12 = smov [#allocation2]  }
  0x4f   : > { %p732_p8 = scmp.ne.s32.totalorder %s1073_s1, %s731_s23  ;;  %s736_s14 = sshll.u32 %s901_s12, 4  ;;  %s737_s14 = int_to_ptr.vmem [resolvable:$false] %s736_s14 }
  0x50   : > { %s738_s17 = scalar_lea.vmem %s737_s14, 512  ;;  %p739_p1 = scmp.lt.s32.totalorder %s1073_s1, %s737_s14 }
  0x51   : > { %p734_p9 = pnand %p732_p8, %p1031_p4  ;;  %p740_p11 = scmp.lt.s32.totalorder %s738_s17, %s731_s23 }
  0x53   : > { %p735_p12 = pneg %p734_p9  ;;  %p741_p6 = por %p740_p11, %p739_p1 }
  0x55   : > { %p742_p13 = pnand %p741_p6, %p735_p12 }
  0x57   : > { %745 = shalt.err (!%p742_p13)
}
  0x58   : > { %s1287_s19 = smov 8   ;;  %s1288_s20 = smov 128  }
  0x59   : > { %611 = dma.hbm_to_vmem [thread:$0]  (!%p1009_p0), %s1070_s10, 256, %s1073_s1, %s195_s11, %s1288_s20, %s1288_s20, %s1287_s19  }
  0x5a   : > { %s242_s29 = scalar_lea.vmem [#allocation7], %s1002_s6  ;;  %s746_s26 = scalar_lea.hbm %s1079_s24, 256 }
  0x5b   : > { %s250_s9 = sshll.u32 %s242_s29, 4  ;;  %p747_p11 = scmp.ne.s32.totalorder %s1079_s24, %s746_s26  ;;  %s1109_s9 = int_to_ptr.vmem [resolvable:$true] %s250_s9 }
  0x5c   : > { %s751_s14 = scalar_lea.hbm %s1255_s2, 512  ;;  %p752_p5 = scmp.lt.u32.totalorder %s1079_s24, %s1255_s2 }
  0x5d   : > { %p749_p2 = pnand %p747_p11, %p1031_p4  ;;  %p753_p7 = scmp.lt.u32.totalorder %s751_s14, %s746_s26 }
  0x5e   : > { %p755_p8 = scmp.lt.u32.totalorder %s746_s26, %s1079_s24 }
  0x5f   : > { %p750_p3 = pneg %p749_p2  ;;  %p754_p10 = por %p753_p7, %p752_p5 }
  0x61   : > { %p756_p9 = por %p755_p8, %p754_p10 }
  0x63   : > { %p757_p12 = pnand %p756_p9, %p750_p3 }
  0x65   : > { %760 = shalt.err (!%p757_p12)
}
  0x66   : > { %s761_s1 = scalar_lea.vmem %s1109_s9, 256  ;;  %s902_s11 = smov [#allocation7]  }
  0x67   : > { %p762_p1 = scmp.ne.s32.totalorder %s1109_s9, %s761_s1  ;;  %s766_s10 = sshll.u32 %s902_s11, 4  ;;  %s767_s10 = int_to_ptr.vmem [resolvable:$false] %s766_s10 }
  0x68   : > { %s768_s0 = scalar_lea.vmem %s767_s10, 512  ;;  %p769_p11 = scmp.lt.s32.totalorder %s1109_s9, %s767_s10 }
  0x69   : > { %p764_p6 = pnand %p762_p1, %p1031_p4  ;;  %p770_p2 = scmp.lt.s32.totalorder %s768_s0, %s761_s1 }
  0x6b   : > { %p765_p13 = pneg %p764_p6  ;;  %p771_p5 = por %p770_p2, %p769_p11 }
  0x6d   : > { %p772_p7 = pnand %p771_p5, %p765_p13 }
  0x6f   : > { %775 = shalt.err (!%p772_p7)
}
  0x70   : > { %617 = dma.hbm_to_vmem [thread:$0]  (!%p1009_p0), %s1079_s24, 256, %s1109_s9, %s1025_s22, %s1288_s20, %s1288_s20, %s1287_s19  }
  0x71   : > { %s1140_s23 = scalar_lea.hbm %s1256_s3, %s1005_s7  ;;  %s264_s12 = scalar_lea.vmem [#allocation8], %s1002_s6 }
  0x72   : > { %s272_s14 = sshll.u32 %s264_s12, 4  ;;  %s261_s17 = scalar_lea.sflag [#allocation9], %s999_s5  ;;  %s1143_s14 = int_to_ptr.vmem [resolvable:$true] %s272_s14 }
  0x73   : > { %s776_s1 = scalar_lea.hbm %s1140_s23, 256  ;;  %s781_s9 = scalar_lea.hbm %s1256_s3, 512 }
  0x74   : > { %p777_p3 = scmp.ne.s32.totalorder %s1140_s23, %s776_s1  ;;  %p782_p9 = scmp.lt.u32.totalorder %s1140_s23, %s1256_s3 }
  0x75   : > { %p783_p12 = scmp.lt.u32.totalorder %s781_s9, %s776_s1  ;;  %p785_p6 = scmp.lt.u32.totalorder %s776_s1, %s1140_s23 }
  0x76   : > { %p779_p10 = pnand %p777_p3, %p1031_p4 }
  0x77   : > { %p784_p1 = por %p783_p12, %p782_p9 }
  0x78   : > { %p780_p8 = pneg %p779_p10 }
  0x79   : > { %p786_p13 = por %p785_p6, %p784_p1 }
  0x7b   : > { %p787_p11 = pnand %p786_p13, %p780_p8 }
  0x7d   : > { %790 = shalt.err (!%p787_p11)
}
  0x7e   : > { %s791_s6 = scalar_lea.vmem %s1143_s14, 256  ;;  %s903_s10 = smov [#allocation8]  }
  0x7f   : > { %p792_p2 = scmp.ne.s32.totalorder %s1143_s14, %s791_s6  ;;  %s796_s0 = sshll.u32 %s903_s10, 4  ;;  %s797_s0 = int_to_ptr.vmem [resolvable:$false] %s796_s0 }
  0x80   : > { %s798_s29 = scalar_lea.vmem %s797_s0, 512  ;;  %p799_p3 = scmp.lt.s32.totalorder %s1143_s14, %s797_s0 }
  0x81   : > { %p794_p5 = pnand %p792_p2, %p1031_p4  ;;  %p800_p10 = scmp.lt.s32.totalorder %s798_s29, %s791_s6 }
  0x83   : > { %p795_p7 = pneg %p794_p5  ;;  %p801_p9 = por %p800_p10, %p799_p3 }
  0x85   : > { %p802_p12 = pnand %p801_p9, %p795_p7 }
  0x87   : > { %805 = shalt.err (!%p802_p12)
}
  0x88   : > { %620 = dma.hbm_to_vmem [thread:$0]  (!%p1009_p0), %s1140_s23, 256, %s1143_s14, %s261_s17, %s1288_s20, %s1288_s20, %s1287_s19  }
  0x89   : > { %p1289_p4 = scmp.ne.s32.totalorder %s1285_s13, 0 }
  0x8a   : > { %s1175_s25 = sand.u32 (!%p1289_p4), 1, %s880_s16   ;;  %p1290_p8 = scmp.ne.s32.totalorder (!%p1289_p4), %s1276_s27, 0 }
  0x8b   : > { %284 = sbr.rel (%p1289_p4) target bundleno = 192 (0xc0), region = 36  ;;  %s1178_s26 = sshll.u32 (!%p1289_p4), %s1175_s25, 4 }
  0x8c   : > { %s287_s8 = scalar_lea.sflag (!%p1289_p4), [#allocation3], %s1175_s25  ;;  %s290_s12 = scalar_lea.vmem (!%p1289_p4), [#allocation2], %s1178_s26 }
  0x92   : > { %859 = dma.done.wait (%p1290_p8), %s287_s8, 256  }
  0x93   : > { %861 = vsyncadd (%p1290_p8), %s287_s8, 4294967040  ;;  %s295_s5 = sand.u32 1, %s961_s21   ;;  %s299_s19 = scalar_lea.vmem [#allocation5], %s1178_s26 }
  0x94   : > { %s296_s13 = scalar_lea.sflag [#allocation6], %s295_s5 }
  0x95   : > { %863 = dma.done.wait (%p1290_p8), %s296_s13, 512  }
  0x96   : > { %865 = vsyncadd (%p1290_p8), %s296_s13, 4294966784  ;;  %s308_s20 = scalar_lea.vmem [#allocation7], %s1178_s26  ;;  %s314_s23 = scalar_lea.sflag [#allocation9], %s1175_s25 }
  0x97   : > { %s317_s14 = scalar_lea.vmem [#allocation8], %s1178_s26 }
  0x98   : > { %867 = dma.done.wait (%p1290_p8), %s314_s23, 256  }
  0x99   : > { %869 = vsyncadd (%p1290_p8), %s314_s23, 4294967040  ;;  %v380_v0 = vld [vmem:[%s308_s20] sm:$0xff]  ;;  %v381_v1 = vld [vmem:[%s308_s20 + $0x8] sm:$0xff]  ;;  %s589_s21 = sshll.u32 %s1175_s25, 3  ;;  %s591_s27 = sshll.u32 %s888_s18, 7 }
  0x9a   : > { %v382_v2 = vmul.f32 %v380_v0, %v380_v0  ;;  %v383_v3 = vmul.f32 %v381_v1, %v381_v1  ;;  %v388_v4 = vld [vmem:[%s317_s14] sm:$0xff]  ;;  %v389_v5 = vld [vmem:[%s317_s14 + $0x8] sm:$0xff]  ;;  %s356_s17 = scalar_lea.vmem [#allocation10], %s589_s21  ;;  %s1204_s9 = scalar_lea.hbm %s1257_s4, %s591_s27 }
  0x9b   : > { %v390_v6 = vmul.f32 %v388_v4, %v388_v4  ;;  %v391_v7 = vmul.f32 %v389_v5, %v389_v5  ;;  %v370_v8 = vld [vmem:[%s290_s12] sm:$0xff]  ;;  %v371_v9 = vld [vmem:[%s290_s12 + $0x8] sm:$0xff]  ;;  %s420_s1 = sshll.u32 %s356_s17, 4  ;;  %s407_s7 = scalar_lea.sflag [#allocation4], %s1175_s25  ;;  %s1206_s1 = int_to_ptr.vmem [resolvable:$true] %s420_s1 }
  0x9c   : > { %678 = vrcp.f32 %v382_v2  ;;  %v372_v10 = vadd.f32 1.0, %v370_v8  ;;  %v373_v11 = vadd.f32 1.0, %v371_v9  ;;  %v374_v12 = vld [vmem:[%s299_s19] sm:$0xff]  ;;  %v375_v13 = vld [vmem:[%s299_s19 + $0x8] sm:$0xff]  ;;  %s806_s11 = scalar_lea.vmem %s1206_s1, 128  ;;  %p1291_p1 = scmp.ne.s32.totalorder %s1277_s28, 0 }
  0x9d   : > { %680 = vrcp.f32 %v383_v3  ;;  %p807_p0 = scmp.ne.s32.totalorder %s1206_s1, %s806_s11  ;;  %s904_s18 = smov [#allocation10]  }
  0x9e   : > { %682 = vrcp.f32 %v390_v6  ;;  %v376_v14 = vsub.f32 %v372_v10, %v374_v12  ;;  %v377_v16 = vsub.f32 %v373_v11, %v375_v13  ;;  %s810_s6 = sshll.u32 %s904_s18, 4  ;;  %s811_s6 = int_to_ptr.vmem [resolvable:$false] %s810_s6 }
  0x9f   : > { %684 = vrcp.f32 %v391_v7  ;;  %p808_p6 = pnand %p807_p0, %p1291_p1  ;;  %s812_s10 = scalar_lea.vmem %s811_s6, 256 }
  0xa0   : > { %v378_v20 = vmax.f32 %v376_v14, 0.0  ;;  %v379_v22 = vmax.f32 %v377_v16, 0.0  ;;  %p813_p11 = scmp.lt.s32.totalorder %s1206_s1, %s811_s6  ;;  %p814_p2 = scmp.lt.s32.totalorder %s812_s10, %s806_s11 }
  0xa1   : > { %p809_p13 = pneg %p808_p6 }
  0xa2   : > { %p815_p5 = por %p814_p2, %p813_p11 }
  0xa4   : > { %p816_p7 = pnand %p815_p5, %p809_p13 }
  0xa6   : > { %v679_v15 = vpop.eup %678 }
  0xa7   : > { %v681_v17 = vpop.eup %680 }
  0xa8   : > { %v683_v18 = vpop.eup %682 }
  0xa9   : > { %v685_v19 = vpop.eup %684  ;;  %v396_v21 = vadd.f32 %v683_v18, %v679_v15 }
  0xaa   : > { %v397_v23 = vadd.f32 %v685_v19, %v681_v17 }
  0xab   : > { %v398_v24 = vmul.f32 0.5, %v396_v21 }
  0xac   : > { %v399_v25 = vmul.f32 0.5, %v397_v23 }
  0xad   : > { %v400_v26 = vmul.f32 %v398_v24, %v378_v20 }
  0xae   : > { %v401_v27 = vmul.f32 %v399_v25, %v379_v22 }
  0xb0   : > { %v402_v28 = vadd.f32 %v401_v27, %v400_v26 }
  0xb2   : > { %405 = vst [vmem:[%s356_s17] sm:$0xff] %v402_v28 }
  0xb3   : > { %819 = shalt.err (!%p816_p7)
}
  0xb4   : > { %s820_s0 = scalar_lea.hbm %s1204_s9, 128  ;;  %s824_s26 = scalar_lea.hbm %s1257_s4, 256 }
  0xb5   : > { %p821_p3 = scmp.ne.s32.totalorder %s1204_s9, %s820_s0  ;;  %p825_p12 = scmp.lt.u32.totalorder %s1204_s9, %s1257_s4 }
  0xb6   : > { %p826_p4 = scmp.lt.u32.totalorder %s824_s26, %s820_s0  ;;  %p828_p0 = scmp.lt.u32.totalorder %s820_s0, %s1204_s9 }
  0xb7   : > { %p822_p10 = pnand %p821_p3, %p1291_p1 }
  0xb8   : > { %p827_p8 = por %p826_p4, %p825_p12 }
  0xb9   : > { %p823_p9 = pneg %p822_p10 }
  0xba   : > { %p829_p6 = por %p828_p0, %p827_p8 }
  0xbc   : > { %p830_p13 = pnand %p829_p6, %p823_p9 }
  0xbe   : > { %833 = shalt.err (!%p830_p13)
}
  0xbf   : > { %606 = dma.vmem_to_hbm [thread:$0]  (%p1291_p1), %s1206_s1, 128, %s1204_s9, %s407_s7  }
  0xc0 PF: > { %s1292_s5 = sld [smem:[#allocation17_spill]]  ;;  %s432_s13 = sand.u32 1, %s876_s15  }
  0xc1   : > { %p1293_p11 = scmp.ne.s32.totalorder %s1279_s30, 0  ;;  %s433_s19 = scalar_lea.sflag [#allocation4], %s432_s13 }
  0xc6   : > { %p1294_p2 = scmp.ge.s32.totalorder %s1292_s5, 2 }
  0xc8   : > { %p622_p5 = pnand %p1294_p2, %p1293_p11 }
  0xca   : > { %871 = dma.done.wait (!%p622_p5), %s433_s19, 128  }
  0xcb   : > { %873 = vsyncadd (!%p622_p5), %s433_s19, 4294967168  ;;  %s26_s20 = sadd.s32 1, %s1292_s5   ;;  %s1295_s23 = sld [smem:[#allocation15_spill]] }
  0xcc   : > { %p23_p7 = scmp.ge.s32.totalorder %s26_s20, 4   ;;  %s1296_s17 = sld [smem:[#allocation19_spill]] }
  0xcd   : > { %s1297_s18 = sld [smem:[#allocation16_spill]]  ;;  %s1298_s19 = sld [smem:[#allocation18_spill]] }
  0xce   : > { %s1299_s15 = smov %s880_s16  ;;  %25 = sbr.rel (!%p23_p7) target bundleno = 13 (0xd), region = 122 }
  0xd1   : > { %s1300_s16 = smov %s1295_s23 }
  0xd5   :  { %438 = vsyncpa [#allocation3], 1 }
  0xd6   :  { %440 = vsyncpa [#allocation3 + $0x1], 1 }
  0xd7   :  { %441 = vsyncpa [#allocation6], 1 }
  0xd8   :  { %443 = vsyncpa [#allocation6 + $0x1], 1 }
  0xd9   :  { %444 = vsyncpa [#allocation9], 1 }
  0xda   :  { %446 = vsyncpa [#allocation9 + $0x1], 1 }
  0xdb   :  { %447 = vsyncpa [#allocation4], 1 }
  0xdc   :  { %449 = vsyncpa [#allocation4 + $0x1], 1 }

</bundles_post_ra>
